<compile_context>
chip_gen: v6e
topology: v6e:2x2x1
jax: 0.10.0
libtpu: 0.0.40
codegen_flags: <defaults>
</compile_context>

<pallas_src>
import jax
import jax.numpy as jnp
from jax.experimental import pallas as pl
from jax.experimental.pallas import tpu as pltpu


def _make_residual_block_kernel(Nb, C_pad, L_pad, L, compute_dtype,
                                eps=1e-5, neg_slope=0.2):
    """Kernel body closed over static shapes. Processes Nb (C_pad, L_pad) samples per step."""
    need_len_mask = (L != L_pad)
    inv_len = 1.0 / float(L)

    def kernel(x_ref, w1_ref, w2_ref, o_ref):
        # Hoisted once: lane iota + boundary / validity masks (JAX does not CSE iota /
        # broadcast_in_dim, so compute them a single time and reuse in both convs & INs).
        lane = jax.lax.broadcasted_iota(jnp.int32, (C_pad, L_pad), 1)
        is_first = lane == 0                      # reflect boundary column l == 0
        is_last = lane == (L - 1)                 # reflect boundary column l == L-1
        valid = (lane < L) if need_len_mask else None

        w1 = w1_ref[...]                          # (C_pad, 3*C_pad) compute_dtype
        w2 = w2_ref[...]

        def conv3_reflect(h_cd, w):
            # ReflectionPad1d(1) + Conv1d(k=3) as im2col:
            #   stacked rows [0:C]   = h[:, l-1]  (reflect: h[:, 1]   at l == 0)
            #   stacked rows [C:2C]  = h[:, l]
            #   stacked rows [2C:3C] = h[:, l+1]  (reflect: h[:, L-2] at l == L-1)
            # Padded lanes never leak into valid lanes: the wrap-around columns of the two
            # rolls are exactly the two boundary columns that the selects overwrite.
            # Conv bias omitted on purpose: a per-channel constant cancels exactly under
            # the InstanceNorm1d(affine=False) that immediately follows.
            h_prev = jnp.where(is_first, h_cd[:, 1:2],
                               pltpu.roll(h_cd, 1, axis=1))
            h_next = jnp.where(is_last, h_cd[:, L - 2:L - 1],
                               pltpu.roll(h_cd, L_pad - 1, axis=1))
            stacked = jnp.concatenate([h_prev, h_cd, h_next], axis=0)   # (3C_pad, L_pad)
            return jnp.dot(w, stacked, preferred_element_type=jnp.float32)

        def instance_norm(h):
            # InstanceNorm1d(affine=False), biased variance; single-sweep f32 statistics
            # over the true L columns only (padded lanes masked out of the sums).
            hm = jnp.where(valid, h, 0.0) if need_len_mask else h
            mean = jnp.sum(hm, axis=1, keepdims=True) * inv_len
            mean_sq = jnp.sum(hm * hm, axis=1, keepdims=True) * inv_len
            var = jnp.maximum(mean_sq - mean * mean, 0.0)
            return (h - mean) * jax.lax.rsqrt(var + eps)

        for i in range(Nb):                               # Nb is small and static
            x_cd = x_ref[i].astype(compute_dtype)         # (C_pad, L_pad)
            h = conv3_reflect(x_cd, w1)                   # conv1 (bias cancels in IN)
            h = instance_norm(h)                          # instance norm 1
            h = jnp.where(h >= 0, h, neg_slope * h)       # LeakyReLU(0.2)
            h = conv3_reflect(h.astype(compute_dtype), w2)  # conv2 (bias cancels in IN)
            h = instance_norm(h)                          # instance norm 2
            # Residual add: re-read x from the VMEM-resident block (no live f32 copy).
            o_ref[i] = (x_ref[i].astype(jnp.float32) + h).astype(o_ref.dtype)

    return kernel


def _pick_samples_per_block(N, bytes_per_sample):
    """Group small samples per grid step; keep >= 2 grid steps when N >= 2 (v7x megacore)."""
    best = 1
    for d in range(1, min(N, 8) + 1):
        if N % d != 0:
            continue
        if d > 1 and d * bytes_per_sample > (1 << 20):
            continue
        if N >= 2 and N // d < 2:
            continue
        best = d
    return best


def residual_block(x, w1, b1, w2, b2, *, compute_dtype=None):
    """Forward pass of the PyTorch ResidualBlock.

    x:  (N, C, L)  -- NCL layout, same as PyTorch Conv1d.
    w*: (C, C, 3)  -- PyTorch Conv1d weight layout (out, in, kernel).
    b*: (C,)       -- Conv1d biases; accepted for API parity but mathematically inert:
                      InstanceNorm1d(affine=False) removes any per-channel constant,
                      so they are neither DMA'd nor added (bit-for-bit-equivalent math).
    compute_dtype: dtype of the MXU matmul operands (accumulation is always f32).
                   Defaults to bf16.
    """
    N, C, L = x.shape
    if compute_dtype is None:
        compute_dtype = jnp.bfloat16
    del b1, b2  # cancelled exactly by the InstanceNorms (affine=False)

    cd_itemsize = jnp.dtype(compute_dtype).itemsize
    sub = 8 * 4 // cd_itemsize               # sublane packing (8 rows f32 / 16 rows bf16)
    C_pad = -(-C // sub) * sub
    L_pad = -(-L // 128) * 128               # lane-dense stores; pltpu.roll always applies

    # Zero-pad x / weights: padded channels stay exactly zero end-to-end and padded lanes
    # never feed valid-lane results, so the result is sliced back exactly.
    if (C_pad, L_pad) != (C, L):
        x_p = jnp.pad(x, ((0, 0), (0, C_pad - C), (0, L_pad - L)))
    else:
        x_p = x

    def pack_w(w):
        wp = jnp.pad(w, ((0, C_pad - C), (0, C_pad - C), (0, 0)))
        # (C_pad, 3*C_pad): columns [k*C_pad:(k+1)*C_pad] hold tap k  (im2col layout)
        return jnp.transpose(wp, (0, 2, 1)).reshape(C_pad, 3 * C_pad).astype(compute_dtype)

    w1_all = pack_w(w1)
    w2_all = pack_w(w2)

    x_itemsize = jnp.dtype(x.dtype).itemsize
    Nb = _pick_samples_per_block(N, C_pad * L_pad * x_itemsize)
    grid = (N // Nb,)

    kernel = _make_residual_block_kernel(Nb, C_pad, L_pad, L, compute_dtype)

    # Weight blocks never change across the grid -> single-buffer them when the saved
    # second buffer is material (>= 1 MiB); matters against v7x's 64 MiB VMEM.
    w_bytes = 3 * C_pad * C_pad * cd_itemsize
    w_spec_kwargs = {}
    if w_bytes >= (1 << 20):
        w_spec_kwargs["pipeline_mode"] = pl.Buffered(1)
    w_spec = pl.BlockSpec((C_pad, 3 * C_pad), lambda n: (0, 0), **w_spec_kwargs)

    # Rough per-step VMEM estimate: double-buffered in/out sample blocks, ~6 f32 + ~6
    # compute_dtype (C_pad, L_pad)-sized live intermediates per sample, weight buffers.
    vmem_est = (2 * 2 * Nb * C_pad * L_pad * x_itemsize
                + Nb * C_pad * L_pad * (6 * 4 + 6 * cd_itemsize)
                + 2 * 2 * w_bytes)
    compiler_kwargs = dict(dimension_semantics=("parallel",))
    if vmem_est > 32 * 1024 * 1024:
        try:
            vmem_cap = pltpu.get_tpu_info().vmem_capacity_bytes
        except Exception:
            vmem_cap = 64 * 1024 * 1024       # smallest per-TC VMEM across v5e/v6e/v7x
        compiler_kwargs["vmem_limit_bytes"] = int(
            min(vmem_est, vmem_cap - 2 * 1024 * 1024))

    out = pl.pallas_call(
        kernel,
        out_shape=jax.ShapeDtypeStruct((N, C_pad, L_pad), x.dtype),
        grid_spec=pltpu.PrefetchScalarGridSpec(
            num_scalar_prefetch=0,
            grid=grid,  # Nb samples per step; "parallel" feeds both v7x cores when grid >= 2
            in_specs=[
                pl.BlockSpec((Nb, C_pad, L_pad), lambda n: (n, 0, 0)),  # x block
                w_spec,                                                 # conv1 im2col weights
                w_spec,                                                 # conv2 im2col weights
            ],
            out_specs=pl.BlockSpec((Nb, C_pad, L_pad), lambda n: (n, 0, 0)),
        ),
        compiler_params=pltpu.CompilerParams(**compiler_kwargs),
    )(x_p, w1_all, w2_all)

    if (C_pad, L_pad) != (C, L):
        out = out[:, :C, :L]
    return out


def _reference(x, w1, b1, w2, b2, eps=1e-5, matmul_dtype=jnp.float32):
    """Pure-JAX reference mirroring the PyTorch module (biases included)."""
    x = x.astype(jnp.float32)

    def conv3(h, w, b):
        hp = jnp.concatenate([h[:, :, 1:2], h, h[:, :, -2:-1]], axis=2)  # reflect pad
        y = jnp.zeros_like(h) + b[None, :, None].astype(jnp.float32)
        for k in range(3):
            y = y + jnp.einsum(
                'oi,nil->nol',
                w[:, :, k].astype(matmul_dtype),
                hp[:, :, k:k + h.shape[2]].astype(matmul_dtype),
                preferred_element_type=jnp.float32)
        return y

    def inorm(h):
        m = jnp.mean(h, axis=2, keepdims=True)
        v = jnp.mean((h - m) ** 2, axis=2, keepdims=True)
        return (h - m) * jax.lax.rsqrt(v + eps)

    h = conv3(x, w1, b1)
    h = inorm(h)
    h = jnp.where(h >= 0, h, 0.2 * h)
    h = conv3(h, w2, b2)
    h = inorm(h)
    return x + h


def _run_case(name, N, C, L, compute_dtype, ref_matmul_dtype, atol, rtol, key):
    kx, kw1, kb1, kw2, kb2 = jax.random.split(key, 5)
    x = jax.random.normal(kx, (N, C, L), dtype=jnp.float32)
    fan_in = C * 3
    bound = 1.0 / (fan_in ** 0.5)
    w1 = jax.random.uniform(kw1, (C, C, 3), jnp.float32, -bound, bound)
    b1 = jax.random.uniform(kb1, (C,), jnp.float32, -bound, bound)
    w2 = jax.random.uniform(kw2, (C, C, 3), jnp.float32, -bound, bound)
    b2 = jax.random.uniform(kb2, (C,), jnp.float32, -bound, bound)

    out = residual_block(x, w1, b1, w2, b2, compute_dtype=compute_dtype)
    out = jax.block_until_ready(out)

    ref = _reference(x, w1, b1, w2, b2, matmul_dtype=ref_matmul_dtype)
    assert out.shape == (N, C, L), f"{name}: bad output shape {out.shape}"
    assert jnp.allclose(out.astype(jnp.float32), ref, atol=atol, rtol=rtol), \
        f"{name}: mismatch vs reference"


if __name__ == "__main__":
    key = jax.random.PRNGKey(0)
    k1, k2 = jax.random.split(key)

    # 1) module-consistent small shapes (batch=2, in_features=4, seq=16): f32 MXU path,
    #    channel + lane padding with masked IN statistics; tight tolerance vs a PyTorch-
    #    equivalent reference WITH biases (verifies the InstanceNorm bias cancellation).
    _run_case("small_f32", N=2, C=4, L=16,
              compute_dtype=jnp.float32, ref_matmul_dtype=jnp.float32,
              atol=1e-4, rtol=1e-4, key=k1)

    # 2) default path (bf16 MXU operands, f32 accumulation), lane-aligned L, multi-sample
    #    blocking (Nb=4, grid=2); compared against a bf16-matmul-emulated reference.
    _run_case("default_bf16", N=8, C=8, L=256,
              compute_dtype=None, ref_matmul_dtype=jnp.bfloat16,
              atol=5e-3, rtol=5e-3, key=k2)

    print("KERNEL_OK")
</pallas_src>

<mosaic_0001>
module attributes {stable_mosaic.version = 11 : i64} {
  func.func @kernel(%arg0: i32, %arg1: memref<1x8x128xf32, #tpu.memory_space<vmem>>, %arg2: memref<8x24xf32, #tpu.memory_space<vmem>>, %arg3: memref<8x24xf32, #tpu.memory_space<vmem>>, %arg4: memref<1x8x128xf32, #tpu.memory_space<vmem>>) attributes {dimension_semantics = [#tpu.dimension_semantics<parallel>], iteration_bounds = array<i64: 2>, scalar_prefetch = 0 : i64, scratch_operands = 0 : i64, tpu.core_type = #tpu.core_type<tc>, window_params = [{transform_indices = @transform_0, window_bounds = array<i64: 1, 8, 128>}, {pipeline_mode = #tpu.pipeline_mode<synchronous>, transform_indices = @transform_1, window_bounds = array<i64: 8, 24>}, {pipeline_mode = #tpu.pipeline_mode<synchronous>, transform_indices = @transform_2, window_bounds = array<i64: 8, 24>}, {transform_indices = @transform_3, window_bounds = array<i64: 1, 8, 128>}]} {
    %0 = tpu.iota {dimensions = array<i32: 1>} : vector<8x128xi32>
    %c0_i32 = arith.constant 0 : i32
    %1 = vector.broadcast %c0_i32 : i32 to vector<8x128xi32>
    %2 = arith.cmpi eq, %0, %1 : vector<8x128xi32>
    %c15_i32 = arith.constant 15 : i32
    %3 = vector.broadcast %c15_i32 : i32 to vector<8x128xi32>
    %4 = arith.cmpi eq, %0, %3 : vector<8x128xi32>
    %c16_i32 = arith.constant 16 : i32
    %5 = vector.broadcast %c16_i32 : i32 to vector<8x128xi32>
    %6 = arith.cmpi slt, %0, %5 : vector<8x128xi32>
    %c0 = arith.constant 0 : index
    %c0_0 = arith.constant 0 : index
    %7 = vector.load %arg2[%c0, %c0_0] : memref<8x24xf32, #tpu.memory_space<vmem>>, vector<8x24xf32>
    %c0_1 = arith.constant 0 : index
    %c0_2 = arith.constant 0 : index
    %8 = vector.load %arg3[%c0_1, %c0_2] : memref<8x24xf32, #tpu.memory_space<vmem>>, vector<8x24xf32>
    %c0_3 = arith.constant 0 : index
    %c0_4 = arith.constant 0 : index
    %c0_5 = arith.constant 0 : index
    %9 = vector.load %arg1[%c0_3, %c0_4, %c0_5] : memref<1x8x128xf32, #tpu.memory_space<vmem>>, vector<1x8x128xf32>
    %10 = vector.shape_cast %9 : vector<1x8x128xf32> to vector<8x128xf32>
    %11 = vector.extract_strided_slice %10 {offsets = [0, 1], sizes = [8, 1], strides = [1, 1]} : vector<8x128xf32> to vector<8x1xf32>
    %c1_i32 = arith.constant 1 : i32
    %12 = tpu.dynamic_rotate %10 by %c1_i32 dim 1 : vector<8x128xf32>, i32 -> vector<8x128xf32>
    %13 = vector.shape_cast %11 : vector<8x1xf32> to vector<8x1xf32>
    %14 = vector.broadcast %13 : vector<8x1xf32> to vector<8x128xf32>
    %15 = arith.select %2, %14, %12 : vector<8x128xi1>, vector<8x128xf32>
    %16 = vector.extract_strided_slice %10 {offsets = [0, 14], sizes = [8, 1], strides = [1, 1]} : vector<8x128xf32> to vector<8x1xf32>
    %c127_i32 = arith.constant 127 : i32
    %17 = tpu.dynamic_rotate %10 by %c127_i32 dim 1 : vector<8x128xf32>, i32 -> vector<8x128xf32>
    %18 = vector.shape_cast %16 : vector<8x1xf32> to vector<8x1xf32>
    %19 = vector.broadcast %18 : vector<8x1xf32> to vector<8x128xf32>
    %20 = arith.select %4, %19, %17 : vector<8x128xi1>, vector<8x128xf32>
    %21 = tpu.concatenate %15, %10, %20 in 0 : vector<8x128xf32>, vector<8x128xf32>, vector<8x128xf32> -> vector<24x128xf32>
    %cst = arith.constant dense<0.000000e+00> : vector<8x128xf32>
    %22 = tpu.matmul %7, %21, %cst {dimension_numbers = #tpu.dot_dimension_numbers<[1], [0], [0], [1], [0, 0, 1, 1], [], []>} : vector<8x24xf32>, vector<24x128xf32>, vector<8x128xf32> -> vector<8x128xf32>
    %cst_6 = arith.constant 0.000000e+00 : f32
    %23 = vector.broadcast %cst_6 : f32 to vector<8x128xf32>
    %24 = arith.select %6, %22, %23 : vector<8x128xi1>, vector<8x128xf32>
    %cst_7 = arith.constant dense<0.000000e+00> : vector<8xf32>
    %25 = vector.multi_reduction <add>, %24, %cst_7 [1] : vector<8x128xf32> to vector<8xf32>
    %26 = vector.shape_cast %25 : vector<8xf32> to vector<8x1xf32>
    %cst_8 = arith.constant 6.250000e-02 : f32
    %27 = vector.broadcast %cst_8 : f32 to vector<8x1xf32>
    %28 = arith.mulf %26, %27 : vector<8x1xf32>
    %29 = arith.mulf %24, %24 : vector<8x128xf32>
    %cst_9 = arith.constant dense<0.000000e+00> : vector<8xf32>
    %30 = vector.multi_reduction <add>, %29, %cst_9 [1] : vector<8x128xf32> to vector<8xf32>
    %31 = vector.shape_cast %30 : vector<8xf32> to vector<8x1xf32>
    %cst_10 = arith.constant 6.250000e-02 : f32
    %32 = vector.broadcast %cst_10 : f32 to vector<8x1xf32>
    %33 = arith.mulf %31, %32 : vector<8x1xf32>
    %34 = arith.mulf %28, %28 : vector<8x1xf32>
    %35 = arith.subf %33, %34 : vector<8x1xf32>
    %cst_11 = arith.constant 0.000000e+00 : f32
    %36 = vector.broadcast %cst_11 : f32 to vector<8x1xf32>
    %37 = arith.maximumf %35, %36 : vector<8x1xf32>
    %38 = vector.broadcast %28 : vector<8x1xf32> to vector<8x128xf32>
    %39 = arith.subf %22, %38 : vector<8x128xf32>
    %cst_12 = arith.constant 9.99999974E-6 : f32
    %40 = vector.broadcast %cst_12 : f32 to vector<8x1xf32>
    %41 = arith.addf %37, %40 : vector<8x1xf32>
    %42 = math.rsqrt %41 : vector<8x1xf32>
    %43 = vector.broadcast %42 : vector<8x1xf32> to vector<8x128xf32>
    %44 = arith.mulf %39, %43 : vector<8x128xf32>
    %cst_13 = arith.constant 0.000000e+00 : f32
    %45 = vector.broadcast %cst_13 : f32 to vector<8x128xf32>
    %46 = arith.cmpf oge, %44, %45 : vector<8x128xf32>
    %cst_14 = arith.constant 2.000000e-01 : f32
    %47 = vector.broadcast %cst_14 : f32 to vector<8x128xf32>
    %48 = arith.mulf %47, %44 : vector<8x128xf32>
    %49 = arith.select %46, %44, %48 : vector<8x128xi1>, vector<8x128xf32>
    %50 = vector.extract_strided_slice %49 {offsets = [0, 1], sizes = [8, 1], strides = [1, 1]} : vector<8x128xf32> to vector<8x1xf32>
    %c1_i32_15 = arith.constant 1 : i32
    %51 = tpu.dynamic_rotate %49 by %c1_i32_15 dim 1 : vector<8x128xf32>, i32 -> vector<8x128xf32>
    %52 = vector.shape_cast %50 : vector<8x1xf32> to vector<8x1xf32>
    %53 = vector.broadcast %52 : vector<8x1xf32> to vector<8x128xf32>
    %54 = arith.select %2, %53, %51 : vector<8x128xi1>, vector<8x128xf32>
    %55 = vector.extract_strided_slice %49 {offsets = [0, 14], sizes = [8, 1], strides = [1, 1]} : vector<8x128xf32> to vector<8x1xf32>
    %c127_i32_16 = arith.constant 127 : i32
    %56 = tpu.dynamic_rotate %49 by %c127_i32_16 dim 1 : vector<8x128xf32>, i32 -> vector<8x128xf32>
    %57 = vector.shape_cast %55 : vector<8x1xf32> to vector<8x1xf32>
    %58 = vector.broadcast %57 : vector<8x1xf32> to vector<8x128xf32>
    %59 = arith.select %4, %58, %56 : vector<8x128xi1>, vector<8x128xf32>
    %60 = tpu.concatenate %54, %49, %59 in 0 : vector<8x128xf32>, vector<8x128xf32>, vector<8x128xf32> -> vector<24x128xf32>
    %cst_17 = arith.constant dense<0.000000e+00> : vector<8x128xf32>
    %61 = tpu.matmul %8, %60, %cst_17 {dimension_numbers = #tpu.dot_dimension_numbers<[1], [0], [0], [1], [0, 0, 1, 1], [], []>} : vector<8x24xf32>, vector<24x128xf32>, vector<8x128xf32> -> vector<8x128xf32>
    %cst_18 = arith.constant 0.000000e+00 : f32
    %62 = vector.broadcast %cst_18 : f32 to vector<8x128xf32>
    %63 = arith.select %6, %61, %62 : vector<8x128xi1>, vector<8x128xf32>
    %cst_19 = arith.constant dense<0.000000e+00> : vector<8xf32>
    %64 = vector.multi_reduction <add>, %63, %cst_19 [1] : vector<8x128xf32> to vector<8xf32>
    %65 = vector.shape_cast %64 : vector<8xf32> to vector<8x1xf32>
    %cst_20 = arith.constant 6.250000e-02 : f32
    %66 = vector.broadcast %cst_20 : f32 to vector<8x1xf32>
    %67 = arith.mulf %65, %66 : vector<8x1xf32>
    %68 = arith.mulf %63, %63 : vector<8x128xf32>
    %cst_21 = arith.constant dense<0.000000e+00> : vector<8xf32>
    %69 = vector.multi_reduction <add>, %68, %cst_21 [1] : vector<8x128xf32> to vector<8xf32>
    %70 = vector.shape_cast %69 : vector<8xf32> to vector<8x1xf32>
    %cst_22 = arith.constant 6.250000e-02 : f32
    %71 = vector.broadcast %cst_22 : f32 to vector<8x1xf32>
    %72 = arith.mulf %70, %71 : vector<8x1xf32>
    %73 = arith.mulf %67, %67 : vector<8x1xf32>
    %74 = arith.subf %72, %73 : vector<8x1xf32>
    %cst_23 = arith.constant 0.000000e+00 : f32
    %75 = vector.broadcast %cst_23 : f32 to vector<8x1xf32>
    %76 = arith.maximumf %74, %75 : vector<8x1xf32>
    %77 = vector.broadcast %67 : vector<8x1xf32> to vector<8x128xf32>
    %78 = arith.subf %61, %77 : vector<8x128xf32>
    %cst_24 = arith.constant 9.99999974E-6 : f32
    %79 = vector.broadcast %cst_24 : f32 to vector<8x1xf32>
    %80 = arith.addf %76, %79 : vector<8x1xf32>
    %81 = math.rsqrt %80 : vector<8x1xf32>
    %82 = vector.broadcast %81 : vector<8x1xf32> to vector<8x128xf32>
    %83 = arith.mulf %78, %82 : vector<8x128xf32>
    %c0_25 = arith.constant 0 : index
    %c0_26 = arith.constant 0 : index
    %c0_27 = arith.constant 0 : index
    %84 = vector.load %arg1[%c0_25, %c0_26, %c0_27] : memref<1x8x128xf32, #tpu.memory_space<vmem>>, vector<1x8x128xf32>
    %85 = vector.shape_cast %84 : vector<1x8x128xf32> to vector<8x128xf32>
    %86 = arith.addf %85, %83 : vector<8x128xf32>
    %c0_28 = arith.constant 0 : index
    %c0_29 = arith.constant 0 : index
    %c0_30 = arith.constant 0 : index
    %87 = vector.load %arg4[%c0_28, %c0_29, %c0_30] : memref<1x8x128xf32, #tpu.memory_space<vmem>>, vector<1x8x128xf32>
    %88 = vector.shape_cast %87 : vector<1x8x128xf32> to vector<8x128xf32>
    %89 = vector.shape_cast %86 : vector<8x128xf32> to vector<1x8x128xf32>
    tpu.vector_store %arg4[%c0_28, %c0_29, %c0_30], %89 {strides = array<i32>} : memref<1x8x128xf32, #tpu.memory_space<vmem>>, vector<1x8x128xf32>,
    return
  }
  func.func @transform_0(%arg0: i32) -> (i32, i32, i32) {
    %c0_i32 = arith.constant 0 : i32
    %c0_i32_0 = arith.constant 0 : i32
    %c0_i32_1 = arith.constant 0 : i32
    return %arg0, %c0_i32, %c0_i32_0 : i32, i32, i32
  }
  func.func @transform_1(%arg0: i32) -> (i32, i32) {
    %c0_i32 = arith.constant 0 : i32
    %c0_i32_0 = arith.constant 0 : i32
    %c0_i32_1 = arith.constant 0 : i32
    return %c0_i32, %c0_i32_0 : i32, i32
  }
  func.func @transform_2(%arg0: i32) -> (i32, i32) {
    %c0_i32 = arith.constant 0 : i32
    %c0_i32_0 = arith.constant 0 : i32
    %c0_i32_1 = arith.constant 0 : i32
    return %c0_i32, %c0_i32_0 : i32, i32
  }
  func.func @transform_3(%arg0: i32) -> (i32, i32, i32) {
    %c0_i32 = arith.constant 0 : i32
    %c0_i32_0 = arith.constant 0 : i32
    %c0_i32_1 = arith.constant 0 : i32
    return %arg0, %c0_i32, %c0_i32_0 : i32, i32, i32
  }
}

</mosaic_0001>

<bundles_post_ra>
// kernel: tpu_custom_call.1
= control target key start
LH: loop header
LB: loop body
LE: loop exit
PB: predicated region body
PF: predicated region fallthrough
CT: control target
= control target key end

     0   :  { %8 = vsyncpa [#allocation3], 0  ;;  %s1036_s0 = inlined_call_operand.hbm [shape: f32[2,8,128], index: 0, kind: input, shape index: {}]   ;;  %s1037_s1 = inlined_call_operand.hbm [shape: f32[8,24], index: 1, kind: input, shape index: {}]   ;;  %s1038_s2 = inlined_call_operand.hbm [shape: f32[8,24], index: 2, kind: input, shape index: {}]   ;;  %s1039_s3 = inlined_call_operand.hbm [shape: f32[2,8,128], index: 3, kind: output, shape index: {}]  }
   0x1   :  { %10 = vsyncpa [#allocation3 + $0x1], 0 }
   0x2   :  { %11 = vsyncpa [#allocation6], 0 }
   0x3   :  { %12 = vsyncpa [#allocation4], 0 }
   0x4   :  { %14 = vsyncpa [#allocation4 + $0x1], 0  ;;  %s839_s12 = smov 0   ;;  %s841_s13 = smov 0  }
   0x5   :  { %s843_s14 = smov 0   ;;  %s845_s15 = smov 0  }
   0x6 LB: > { %s860_s16 = sadd.s32 4294967295, %s807_s15   ;;  %s534_s17 = sadd.s32 4294967294, %s807_s15   ;;  %s807_s15 = sphi %s845_s15, %s1061_s15   ;;  %s803_s14 = sphi %s843_s14, %s1060_s14   ;;  %s799_s13 = sphi %s841_s13, %s1059_s13   ;;  %s795_s12 = sphi %s839_s12, %s1058_s12  }
   0x7   : > { %p40_p0 = scmp.ne.s32.totalorder %s799_s13, %s795_s12  ;;  %p1040_p1 = scmp.eq.s32.totalorder %s860_s16, 0 }
   0x8   : > { %p112_p3 = scmp.eq.s32.totalorder %s534_s17, 1  ;;  %p535_p5 = scmp.ge.s32.totalorder %s807_s15, 1 }
   0x9   : > { %p869_p4 = por %p1040_p1, %p40_p0  ;;  %p119_p7 = scmp.lt.s32.totalorder %s807_s15, 3 }
   0xa   : > { %p874_p6 = por %p112_p3, %p40_p0  ;;  %s809_s21 = smov [#allocation5]  }
   0xb   : > { %s1044_s18 = scalar_select %p869_p4, 1, 0 }
   0xc   : > { %s1045_s19 = scalar_select %p874_p6, 1, 0 }
   0xd   : > { %p879_p8 = pnand %p535_p5, %p119_p7  ;;  %s132_s22 = sshll.u32 %s809_s21, 4  ;;  %s133_s22 = int_to_ptr.vmem [resolvable:$true] %s132_s22 }
   0xe   : > { %s810_s23 = smov [#allocation7]   ;;  %s893_s26 = sadd.s32 1, %s807_s15  }
   0xf   : > { %s1046_s20 = scalar_select %p879_p8, 1, 0 }
  0x10   : > { %p590_p10 = pneg %p879_p8  ;;  %s143_s24 = sshll.u32 %s810_s23, 4  ;;  %s144_s24 = int_to_ptr.vmem [resolvable:$true] %s143_s24 }
  0x11   : > { %s24_s27 = ssub.s32 %s807_s15, %s893_s26  ;;  %s670_s28 = scalar_lea.vmem %s133_s22, 128 }
  0x12   : > { %p888_p11 = pnand %p590_p10, %p1040_p1  ;;  %p671_p13 = scmp.ne.s32.totalorder %s133_s22, %s670_s28 }
  0x13   : > { %p678_p5 = scmp.lt.s32.totalorder %s133_s22, %s133_s22  ;;  %p679_p7 = scmp.lt.s32.totalorder %s670_s28, %s670_s28 }
  0x14   : > { %p661_p12 = pneg %p888_p11 }
  0x15   : > { %p680_p10 = por %p679_p7, %p678_p5 }
  0x16   : > { %p673_p0 = pnand %p671_p13, %p661_p12 }
  0x18   : > { %p674_p3 = pneg %p673_p0 }
  0x1a   : > { %p681_p9 = pnand %p680_p10, %p674_p3 }
  0x1c   : > { %684 = shalt.err (!%p681_p9)
}
  0x1d   : > { %593 = dma.hbm_to_vmem [thread:$0]  (!%p888_p11), %s1037_s1, 128, %s133_s22, [#allocation6]  }
  0x1e   : > { %s696_s4 = scalar_lea.vmem %s144_s24, 128  ;;  %p704_p13 = scmp.lt.s32.totalorder %s144_s24, %s144_s24 }
  0x1f   : > { %p697_p1 = scmp.ne.s32.totalorder %s144_s24, %s696_s4  ;;  %p705_p0 = scmp.lt.s32.totalorder %s696_s4, %s696_s4 }
  0x21   : > { %p699_p2 = pnand %p697_p1, %p661_p12  ;;  %p706_p4 = por %p705_p0, %p704_p13 }
  0x23   : > { %p700_p6 = pneg %p699_p2 }
  0x25   : > { %p707_p8 = pnand %p706_p4, %p700_p6 }
  0x27   : > { %710 = shalt.err (!%p707_p8)
}
  0x28   : > { %596 = dma.hbm_to_vmem [thread:$0]  (!%p888_p11), %s1038_s2, 128, %s144_s24, [#allocation6]  }
  0x29   : > { %p25_p1 = scmp.eq.s32.totalorder %s24_s27, 0  ;;  %s27_s7 = sadd.s32 1, %s803_s14 }
  0x2a   : > { %p34_p2 = scmp.ne.s32.totalorder %s803_s14, %s799_s13  ;;  %p35_p4 = scmp.eq.s32.totalorder %s807_s15, 0 }
  0x2b   : > { %s920_s8 = scalar_select %p25_p1, %s803_s14, %s27_s7  }
  0x2c   : > { %p36_p6 = por %p35_p4, %p34_p2  ;;  %p1048_p8 = scmp.eq.s32.totalorder %s860_s16, 1 }
  0x2d   : > { %p607_p12 = scmp.lt.s32.totalorder %s807_s15, 2  ;;  %s154_s10 = sand.u32 1, %s803_s14  }
  0x2e   : > { %p924_p9 = por %p1048_p8, %p34_p2  ;;  %s539_s11 = sshll.u32 %s154_s10, 3 }
  0x2f   : > { %s540_s17 = sshll.u32 %s807_s15, 7  ;;  %s158_s24 = scalar_lea.vmem [#allocation2], %s539_s11 }
  0x30   : > { %s1049_s9 = scalar_select %p924_p9, 1, 0 }
  0x31   : > { %s934_s23 = scalar_lea.hbm %s1036_s0, %s540_s17  ;;  %s165_s25 = sshll.u32 %s158_s24, 4  ;;  %s166_s25 = int_to_ptr.vmem [resolvable:$true] %s165_s25 }
  0x32   : > { %p936_p11 = pnand %p607_p12, %p36_p6  ;;  %s155_s28 = scalar_lea.sflag [#allocation3], %s154_s10 }
  0x33   : > { %s711_s29 = scalar_lea.hbm %s934_s23, 128  ;;  %s716_s5 = scalar_lea.hbm %s1036_s0, 256 }
  0x34   : > { %p712_p3 = scmp.ne.s32.totalorder %s934_s23, %s711_s29  ;;  %p713_p5 = pneg %p936_p11 }
  0x35   : > { %p717_p13 = scmp.lt.s32.totalorder %s934_s23, %s1036_s0  ;;  %p718_p0 = scmp.lt.s32.totalorder %s716_s5, %s711_s29 }
  0x36   : > { %p714_p7 = pnand %p713_p5, %p712_p3 }
  0x37   : > { %p719_p1 = por %p718_p0, %p717_p13 }
  0x38   : > { %p715_p10 = pneg %p714_p7 }
  0x3a   : > { %p720_p2 = pnand %p719_p1, %p715_p10 }
  0x3c   : > { %723 = shalt.err (!%p720_p2)
}
  0x3d   : > { %s724_s11 = scalar_lea.vmem %s166_s25, 128  ;;  %s811_s10 = smov [#allocation2]  }
  0x3e   : > { %p725_p4 = scmp.ne.s32.totalorder %s166_s25, %s724_s11  ;;  %s729_s17 = sshll.u32 %s811_s10, 4  ;;  %s730_s17 = int_to_ptr.vmem [resolvable:$false] %s729_s17 }
  0x3f   : > { %s731_s21 = scalar_lea.vmem %s730_s17, 256  ;;  %p732_p12 = scmp.lt.s32.totalorder %s166_s25, %s730_s17 }
  0x40   : > { %p727_p6 = pnand %p725_p4, %p713_p5  ;;  %p733_p3 = scmp.lt.s32.totalorder %s731_s21, %s724_s11 }
  0x42   : > { %p728_p8 = pneg %p727_p6  ;;  %p734_p7 = por %p733_p3, %p732_p12 }
  0x44   : > { %p735_p9 = pnand %p734_p7, %p728_p8 }
  0x46   : > { %738 = shalt.err (!%p735_p9)
}
  0x47   : > { %600 = dma.hbm_to_vmem [thread:$0]  (!%p936_p11), %s934_s23, 128, %s166_s25, %s155_s28  }
  0x48   : > { %p1051_p10 = scmp.ne.s32.totalorder %s1046_s20, 0 }
  0x49   : > { %s957_s22 = sand.u32 (!%p1051_p10), 1, %s799_s13   ;;  %p1052_p5 = scmp.ne.s32.totalorder (!%p1051_p10), %s1044_s18, 0 }
  0x4a   : > { %174 = sbr.rel (%p1051_p10) target bundleno = 1085 (0x43d), region = 32  ;;  %s542_s24 = sshll.u32 (!%p1051_p10), %s957_s22, 3 }
  0x4b   : > { %s177_s29 = scalar_lea.sflag (!%p1051_p10), [#allocation3], %s957_s22  ;;  %s180_s30 = scalar_lea.vmem (!%p1051_p10), [#allocation2], %s542_s24 }
  0x4f   : > { %782 = dma.done.wait (%p1052_p5), %s177_s29, 128  }
  0x50   : > { %784 = vsyncadd (%p1052_p5), %s177_s29, 4294967168  ;;  %p1053_p9 = scmp.eq.s32.totalorder %s860_s16, 0 }
  0x52   : > { %786 = dma.done.wait (%p1053_p9), [#allocation6], 256   ;;  %p1054_p11 = pmov %p1053_p9 }
  0x53   : > { %v812_v0 = vmov 14   ;;  %v813_v1 = vmov 1   ;;  %v814_v2 = vmov 0.0   ;;  %v973_v3 = vld [vmem:[%s180_s30] sm:$0xff]  ;;  %s815_s18 = smov 127   ;;  %vm816_vm0 = vmmov 0  }
  0x54   : > { %788 = vsyncadd (%p1054_p11), [#allocation6], 4294967040  ;;  %651 = vset.pattern.permute.xlu0 %v812_v0  ;;  %654 = vset.pattern.permute.xlu1 %v813_v1  ;;  %s817_s20 = smov 1   ;;  %v211_v4 = vlaneseq  ;;  %v216_v11 = vld [vmem:[#allocation5] sm:$0xff]  ;;  %vm234_vm3 = vcmask 195584   ;;  %v217_v35 = vld [vmem:[#allocation7] sm:$0xff] }
  0x55   : > { %560 = vmatprep.subr.mxu0 %v814_v2  ;;  %569 = vmatprep.subr.mxu1 %v814_v2  ;;  %s549_s23 = sshll.u32 %s860_s16, 7  ;;  %s210_s25 = scalar_lea.vmem [#allocation8], %s542_s24 }
  0x56   : > { %230 = vperm.xlu0 %651, %v973_v3   ;;  %227 = vrot.lane.b32.xlu1 %v973_v3, %s815_s18  ;;  %v212_v5 = vand.u32 127, %v211_v4  ;;  %s445_s27 = sshll.u32 %s210_s25, 4  ;;  %s443_s5 = scalar_lea.hbm %s1039_s3, %s549_s23  ;;  %s446_s27 = int_to_ptr.vmem [resolvable:$true] %s445_s27 }
  0x57   : > { %566 = vmatprep.mubr.msk.f32.mxu0 %vm816_vm0, %v814_v2  ;;  %575 = vmatprep.mubr.msk.f32.mxu1 %vm816_vm0, %v814_v2  ;;  %s432_s6 = scalar_lea.sflag [#allocation4], %s957_s22  ;;  %s739_s7 = scalar_lea.vmem %s446_s27, 128 }
  0x58   : > { %vm214_vm1 = vcmp.eq.s32.totalorder %v212_v5, 15  ;;  %vm213_vm2 = vcmp.eq.s32.totalorder %v212_v5, 0  ;;  %vm215_vm4 = vcmp.lt.s32.totalorder %v212_v5, 16  ;;  %p740_p13 = scmp.ne.s32.totalorder %s446_s27, %s739_s7  ;;  %p1055_p0 = scmp.ne.s32.totalorder %s1049_s9, 0 }
  0x59   : > { %s818_s11 = smov [#allocation8]  }
  0x5a   : > { %652 = vset.pattern.permute.xlu0 %v813_v1  ;;  %219 = vrot.lane.b32.xlu1 %v973_v3, %s817_s20  ;;  %p741_p1 = pnand %p740_p13, %p1055_p0  ;;  %s743_s16 = sshll.u32 %s818_s11, 4  ;;  %s744_s16 = int_to_ptr.vmem [resolvable:$false] %s743_s16 }
  0x5b   : > { %223 = vperm.xlu0 %652, %v973_v3   ;;  %s745_s10 = scalar_lea.vmem %s744_s16, 256  ;;  %p746_p4 = scmp.lt.s32.totalorder %s446_s27, %s744_s16 }
  0x5c   : > { %p742_p2 = pneg %p741_p1  ;;  %p747_p6 = scmp.lt.s32.totalorder %s745_s10, %s739_s7 }
  0x5e   : > { %p748_p8 = por %p747_p6, %p746_p4 }
  0x5f   : > { %653 = vset.pattern.permute.xlu0 %v812_v0 }
  0x60   : > { %p749_p12 = pnand %p748_p8, %p742_p2 }
  0xc8   : > { %v228_v6 = vpop.permute.xlu1 %227 }
  0xcc   : > { %v220_v9 = vpop.permute.xlu1 %219 }
  0xd1   : > { %v231_v7 = vpop.permute.xlu0 %230 }
  0xd2   : > { %v233_v8 = vsel %vm214_vm1, %v231_v7, %v228_v6 }
  0xd3   : > { %561 = vmatpush3.msra.mxu0 %v233_v8 }
  0xd4   : > { %562 = vmatprep.subr.mxu0 %v814_v2 }
  0xd5   : > { %563 = vmatpush3.msra.mxu0 %v973_v3 }
  0xd6   : > { %v224_v10 = vpop.permute.xlu0 %223  ;;  %564 = vmatprep.subr.mxu0 %v814_v2 }
  0xd7   : > { %v226_v12 = vsel %vm213_vm2, %v224_v10, %v220_v9 }
  0xd8   : > { %565 = vmatpush3.msra.mxu0 %v226_v12 }
  0xd9   : > { %567 = vmatmul.mubr.msk.f32.vlgmr.msra.gmra.mxu0 %vm234_vm3, %v216_v11 }
 0x199   : > { %v304_v13 = vpop.f32.mrf.mxu0 }
 0x19a   : > { %v308_v14 = vsel %vm215_vm4, %v304_v13, 0.0 }
 0x19b   : > { %309 = vadd.xlane.f32.xlu1 %v308_v14  ;;  %v568_v15 = vpop.f32.mrf.mxu0  ;;  %v312_v16 = vmul.f32 %v308_v14, %v308_v14 }
 0x19d   : > { %313 = vadd.xlane.f32.xlu0 %v312_v16 }
 0x224   : > { %v310_v17 = vpop.xlane.xlu1 %309 }
 0x225   : > { %v311_v18 = vmul.f32 0.0625, %v310_v17 }
 0x226   : > { %v314_v19 = vpop.xlane.xlu0 %313 }
 0x227   : > { %v316_v20 = vmul.f32 %v311_v18, %v311_v18  ;;  %v315_v21 = vmul.f32 0.0625, %v314_v19  ;;  %v319_v25 = vsub.f32 %v304_v13, %v311_v18 }
 0x229   : > { %v317_v22 = vsub.f32 %v315_v21, %v316_v20 }
 0x22b   : > { %v318_v23 = vmax.f32 %v317_v22, 0.0 }
 0x22d   : > { %v320_v24 = vadd.f32 1e-05, %v318_v23 }
 0x22f   : > { %655 = vrsqrt.f32 %v320_v24 }
 0x23c   : > { %v656_v26 = vpop.eup %655 }
 0x23d   : > { %v322_v27 = vmul.f32 %v656_v26, %v319_v25 }
 0x23f   : > { %vm323_vm5 = vcmp.ge.f32.partialorder %v322_v27, 0.0  ;;  %v324_v28 = vmul.f32 0.2, %v322_v27 }
 0x241   : > { %v325_v29 = vsel %vm323_vm5, %v322_v27, %v324_v28 }
 0x242   : > { %330 = vperm.xlu1 %654, %v325_v29   ;;  %337 = vperm.xlu0 %653, %v325_v29  }
 0x246   : > { %334 = vrot.lane.b32.xlu1 %v325_v29, %s815_s18 }
 0x24a   : > { %326 = vrot.lane.b32.xlu1 %v325_v29, %s817_s20 }
 0x2bd   : > { %v331_v30 = vpop.permute.xlu1 %330  ;;  %v338_v31 = vpop.permute.xlu0 %337 }
 0x2c1   : > { %v335_v32 = vpop.permute.xlu1 %334 }
 0x2c2   : > { %v340_v33 = vsel %vm214_vm1, %v338_v31, %v335_v32 }
 0x2c3   : > { %570 = vmatpush3.msra.mxu1 %v340_v33 }
 0x2c4   : > { %571 = vmatprep.subr.mxu1 %v814_v2 }
 0x2c5   : > { %v327_v34 = vpop.permute.xlu1 %326  ;;  %572 = vmatpush3.msra.mxu1 %v325_v29 }
 0x2c6   : > { %573 = vmatprep.subr.mxu1 %v814_v2  ;;  %v333_v36 = vsel %vm213_vm2, %v331_v30, %v327_v34 }
 0x2c7   : > { %574 = vmatpush3.msra.mxu1 %v333_v36 }
 0x2c8   : > { %576 = vmatmul.mubr.msk.f32.vlgmr.msra.gmra.mxu1 %vm234_vm3, %v217_v35 }
 0x388   : > { %v410_v37 = vpop.f32.mrf.mxu1 }
 0x389   : > { %v414_v38 = vsel %vm215_vm4, %v410_v37, 0.0 }
 0x38a   : > { %415 = vadd.xlane.f32.xlu1 %v414_v38  ;;  %v577_v39 = vpop.f32.mrf.mxu1  ;;  %v418_v40 = vmul.f32 %v414_v38, %v414_v38 }
 0x38c   : > { %419 = vadd.xlane.f32.xlu0 %v418_v40 }
 0x413   : > { %v416_v41 = vpop.xlane.xlu1 %415 }
 0x414   : > { %v417_v42 = vmul.f32 0.0625, %v416_v41 }
 0x415   : > { %v420_v43 = vpop.xlane.xlu0 %419 }
 0x416   : > { %v422_v44 = vmul.f32 %v417_v42, %v417_v42  ;;  %v421_v45 = vmul.f32 0.0625, %v420_v43  ;;  %v425_v49 = vsub.f32 %v410_v37, %v417_v42 }
 0x418   : > { %v423_v46 = vsub.f32 %v421_v45, %v422_v44 }
 0x41a   : > { %v424_v47 = vmax.f32 %v423_v46, 0.0 }
 0x41c   : > { %v426_v48 = vadd.f32 1e-05, %v424_v47 }
 0x41e   : > { %657 = vrsqrt.f32 %v426_v48 }
 0x42b   : > { %v658_v50 = vpop.eup %657 }
 0x42c   : > { %v428_v51 = vmul.f32 %v658_v50, %v425_v49 }
 0x42e   : > { %v429_v52 = vadd.f32 %v428_v51, %v973_v3 }
 0x430   : > { %430 = vst [vmem:[%s210_s25] sm:$0xff] %v429_v52 }
 0x431   : > { %752 = shalt.err (!%p749_p12)
}
 0x432   : > { %s753_s17 = scalar_lea.hbm %s443_s5, 128  ;;  %s757_s24 = scalar_lea.hbm %s1039_s3, 256 }
 0x433   : > { %p754_p3 = scmp.ne.s32.totalorder %s443_s5, %s753_s17  ;;  %p758_p5 = scmp.lt.s32.totalorder %s443_s5, %s1039_s3 }
 0x434   : > { %p759_p9 = scmp.lt.s32.totalorder %s757_s24, %s753_s17 }
 0x435   : > { %p755_p7 = pnand %p754_p3, %p1055_p0 }
 0x436   : > { %p760_p11 = por %p759_p9, %p758_p5 }
 0x437   : > { %p756_p10 = pneg %p755_p7 }
 0x439   : > { %p761_p13 = pnand %p760_p11, %p756_p10 }
 0x43b   : > { %764 = shalt.err (!%p761_p13)
}
 0x43c   : > { %588 = dma.vmem_to_hbm [thread:$0]  (%p1055_p0), %s446_s27, 128, %s443_s5, %s432_s6  }
 0x43d PF: > { %s457_s18 = sand.u32 1, %s795_s12   ;;  %p1056_p1 = scmp.ne.s32.totalorder %s1045_s19, 0 }
 0x43e   : > { %p1057_p2 = scmp.ge.s32.totalorder %s807_s15, 2  ;;  %s458_s20 = scalar_lea.sflag [#allocation4], %s457_s18 }
 0x440   : > { %p602_p4 = pnand %p1057_p2, %p1056_p1 }
 0x442   : > { %p603_p6 = pneg %p602_p4 }
 0x444   : > { %790 = dma.done.wait (%p603_p6), %s458_s20, 128  }
 0x445   : > { %792 = vsyncadd (%p603_p6), %s458_s20, 4294967168  ;;  %p17_p8 = scmp.ge.s32.totalorder %s893_s26, 4   ;;  %s1058_s12 = smov %s799_s13 }
 0x446   : > { %s1059_s13 = smov %s803_s14  ;;  %s1060_s14 = smov %s920_s8 }
 0x447   : > { %s1061_s15 = smov %s893_s26  ;;  %19 = sbr.rel (!%p17_p8) target bundleno = 6 (0x6), region = 85 }
 0x44c   :  { %463 = vsyncpa [#allocation3], 1 }
 0x44d   :  { %465 = vsyncpa [#allocation3 + $0x1], 1 }
 0x44e   :  { %466 = vsyncpa [#allocation6], 1 }
 0x44f   :  { %467 = vsyncpa [#allocation4], 1 }
 0x450   :  { %469 = vsyncpa [#allocation4 + $0x1], 1 }

</bundles_post_ra>
